<compile_context>
chip_gen: v7x
topology: tpu7x:2x2x1
jax: 0.10.0
libtpu: 0.0.40
codegen_flags: <defaults>
</compile_context>

<pallas_src>
import math

import jax
import jax.numpy as jnp
from jax.experimental import pallas as pl
from jax.experimental.pallas import tpu as pltpu

_HP = jax.lax.Precision.HIGHEST


def _dot(a, b):
    return jnp.dot(a, b, preferred_element_type=jnp.float32)


# --------------------------------------------------------------------------- #
# Kernel 1: node-level projections (1-D grid over node tiles).
# First (linear) layers of pos_nn / attn_nn are distributed over the pairwise
# subtraction, and every bias is folded here so the pairwise kernel is bias-free.
# --------------------------------------------------------------------------- #
def proj_kernel(
    x_ref, pos_ref,
    wlin_ref, wsa_ref, wda_ref, wp1_ref,
    blin_ref, bd1_ref, bp1_ref,
    xlin_ref, s1_ref, d1_ref, p1s_ref, p1t_ref,
):
    x = x_ref[...]
    p1 = _dot(pos_ref[...], wp1_ref[...])                       # pos · wp1
    xlin_ref[...] = _dot(x, wlin_ref[...]) + blin_ref[...]      # lin(x_j) + bp2
    s1_ref[...] = _dot(x, wsa_ref[...])                         # x_j · w_src · wa1
    d1_ref[...] = _dot(x, wda_ref[...]) + bd1_ref[...]          # x_i · w_dst · wa1 + ba1 + bp2·wa1
    p1s_ref[...] = p1                                           # source side (no bias)
    p1t_ref[...] = p1 + bp1_ref[...]                            # target side (+ bp1)


# --------------------------------------------------------------------------- #
# Kernel 2: pairwise MLPs + masked online softmax + aggregation.
# Grid = (target tiles ["parallel"], source tiles ["arbitrary"]).
# Channel / hidden dims (C = H = 3) are unrolled in Python and applied as SMEM
# scalar broadcasts on the VPU (an MXU matmul with K=3 would waste the array).
# --------------------------------------------------------------------------- #
def pt_tile_kernel(
    bias_ref,                     # (T, S)  bf16 additive softmax mask (0 / -3e38)
    d1_ref, p1t_ref,              # (T, H)  per-target projections (biases folded in)
    s1_ref, p1s_ref, xlin_ref,    # (H, S), (H, S), (C, S)  per-source (transposed)
    wa1_ref, wp2_ref, wa2_ref,    # SMEM (C,H), (H,C), (H,C)
    out_ref,                      # (T, C)
    m_sc, den_sc, num_sc,         # VMEM (T, C) online-softmax running state
):
    s_idx = pl.program_id(1)
    H = s1_ref.shape[0]
    C = xlin_ref.shape[0]

    @pl.when(s_idx == 0)
    def _():
        m_sc[...] = jnp.full_like(m_sc, -3.0e38)
        den_sc[...] = jnp.zeros_like(den_sc)
        num_sc[...] = jnp.zeros_like(num_sc)

    bias = bias_ref[...].astype(jnp.float32)                     # (T, S)

    # pos_nn hidden (bp1 already folded into p1t): hp[h] = relu(p1t_i[h] - p1s_j[h])
    hp = [
        jnp.maximum(p1t_ref[:, h:h + 1] - p1s_ref[h:h + 1, :], 0.0)
        for h in range(H)
    ]

    # pos_nn output minus its bias (bp2 folded into xlin / d1): delta[c] = sum_h wp2[h,c]*hp[h]
    delta = []
    for c in range(C):
        acc = hp[0] * wp2_ref[0, c]
        for h in range(1, H):
            acc = acc + hp[h] * wp2_ref[h, c]
        delta.append(acc)                                        # (T, S)

    # attn_nn hidden (ba1 + bp2·wa1 already folded into d1):
    #   ha[h] = relu(d1_i[h] - s1_j[h] + sum_c wa1[c,h] * delta[c])
    ha = []
    for h in range(H):
        acc = d1_ref[:, h:h + 1] - s1_ref[h:h + 1, :]
        for c in range(C):
            acc = acc + delta[c] * wa1_ref[c, h]
        ha.append(jnp.maximum(acc, 0.0))                         # (T, S)

    # Per-channel masked online softmax over sources + divide-after-reduce.
    for c in range(C):
        acc = ha[0] * wa2_ref[0, c]
        for h in range(1, H):
            acc = acc + ha[h] * wa2_ref[h, c]
        alpha = acc + bias                                       # ba2 dropped (shift-invariant)

        m_old = m_sc[:, c:c + 1]
        m_new = jnp.maximum(m_old, jnp.max(alpha, axis=1, keepdims=True))   # (T, 1)
        scale = jnp.exp(m_old - m_new)                           # (T, 1)
        p = jnp.exp(alpha - m_new)                               # masked entries underflow to 0
        den_sc[:, c:c + 1] = scale * den_sc[:, c:c + 1] + jnp.sum(p, axis=1, keepdims=True)
        num_sc[:, c:c + 1] = scale * num_sc[:, c:c + 1] + jnp.sum(
            p * (xlin_ref[c:c + 1, :] + delta[c]), axis=1, keepdims=True)
        m_sc[:, c:c + 1] = m_new

    @pl.when(s_idx == pl.num_programs(1) - 1)
    def _():
        den = jnp.maximum(den_sc[...], jnp.float32(1e-20))       # guard (padded rows only)
        out_ref[...] = num_sc[...] * pl.reciprocal(den, approx=True)


# --------------------------------------------------------------------------- #
# Wrapper
# --------------------------------------------------------------------------- #
def point_trans_forward(x, pos, adj, params, tile_t=128, tile_s=None):
    """adj: dense target-major mask (N_tgt, N_src), adj[i, j]=1 iff edge j -> i
    (self-loops included, as PointTransformerConv adds them)."""
    x = x.astype(jnp.float32)
    pos = pos.astype(jnp.float32)
    n = x.shape[0]
    c_in = x.shape[1]
    c_out = params["w_lin"].shape[1]
    h_dim = params["wp1"].shape[1]

    if tile_s is None:
        tile_s = min(512, ((n + 127) // 128) * 128)
    assert tile_t % 8 == 0 and tile_s % 128 == 0

    pad_unit = math.lcm(tile_t, tile_s)
    n_pad = ((n + pad_unit - 1) // pad_unit) * pad_unit
    padn = n_pad - n
    x_p = jnp.pad(x, ((0, padn), (0, 0)))
    pos_p = jnp.pad(pos, ((0, padn), (0, 0)))
    adj_p = jnp.pad(adj.astype(jnp.float32), ((0, padn), (0, padn)))

    # Additive softmax mask: 0 on edges, -3e38 elsewhere; streamed as bf16.
    # Large finite (not -inf) so fully-masked (padded) rows never hit inf - inf.
    bias_adj = jnp.where(adj_p > 0.5, 0.0, -3.0e38).astype(jnp.bfloat16)

    # Fold the (linear) first attn layer through lin_src / lin_dst, and fold biases.
    w_sa = jnp.dot(params["w_src"], params["wa1"])               # (C_in, H)
    w_da = jnp.dot(params["w_dst"], params["wa1"])               # (C_in, H)
    b_lin = params["bp2"].reshape(1, -1)                         # (1, C)  -> xlin + bp2
    b_d1 = params["ba1"].reshape(1, -1) + jnp.dot(params["bp2"].reshape(1, -1), params["wa1"])
    b_p1 = params["bp1"].reshape(1, -1)                          # (1, H)

    f32 = jnp.float32
    grid_t = n_pad // tile_t
    grid_s = n_pad // tile_s

    # --- node-level projections (tiny matmuls, 1-D grid over node tiles) ---
    xlin, s1, d1, p1s, p1t = pl.pallas_call(
        proj_kernel,
        out_shape=(
            jax.ShapeDtypeStruct((n_pad, c_out), f32),
            jax.ShapeDtypeStruct((n_pad, h_dim), f32),
            jax.ShapeDtypeStruct((n_pad, h_dim), f32),
            jax.ShapeDtypeStruct((n_pad, h_dim), f32),
            jax.ShapeDtypeStruct((n_pad, h_dim), f32),
        ),
        grid_spec=pltpu.PrefetchScalarGridSpec(
            num_scalar_prefetch=0,
            grid=(grid_t,),
            in_specs=[
                pl.BlockSpec((tile_t, c_in), lambda t: (t, 0)),
                pl.BlockSpec((tile_t, 3), lambda t: (t, 0)),
                pl.BlockSpec((c_in, c_out), lambda t: (0, 0)),
                pl.BlockSpec((c_in, h_dim), lambda t: (0, 0)),
                pl.BlockSpec((c_in, h_dim), lambda t: (0, 0)),
                pl.BlockSpec((3, h_dim), lambda t: (0, 0)),
                pl.BlockSpec((1, c_out), lambda t: (0, 0)),
                pl.BlockSpec((1, h_dim), lambda t: (0, 0)),
                pl.BlockSpec((1, h_dim), lambda t: (0, 0)),
            ],
            out_specs=(
                pl.BlockSpec((tile_t, c_out), lambda t: (t, 0)),
                pl.BlockSpec((tile_t, h_dim), lambda t: (t, 0)),
                pl.BlockSpec((tile_t, h_dim), lambda t: (t, 0)),
                pl.BlockSpec((tile_t, h_dim), lambda t: (t, 0)),
                pl.BlockSpec((tile_t, h_dim), lambda t: (t, 0)),
            ),
        ),
        compiler_params=pltpu.CompilerParams(dimension_semantics=("parallel",)),
    )(x_p, pos_p, params["w_lin"], w_sa, w_da, params["wp1"], b_lin, b_d1, b_p1)

    # Tiny (N, 3) -> (3, N) transposes in XLA for the lane-dense source layout.
    xlin_t = xlin.T
    s1_t = s1.T
    p1s_t = p1s.T

    smem = pl.BlockSpec(memory_space=pltpu.MemorySpace.SMEM)

    # --- pairwise kernel: targets ("parallel") x source tiles ("arbitrary") ---
    out_pad = pl.pallas_call(
        pt_tile_kernel,
        out_shape=jax.ShapeDtypeStruct((n_pad, c_out), f32),
        grid_spec=pltpu.PrefetchScalarGridSpec(
            num_scalar_prefetch=0,
            grid=(grid_t, grid_s),
            in_specs=[
                pl.BlockSpec((tile_t, tile_s), lambda t, s: (t, s)),   # additive mask (bf16)
                pl.BlockSpec((tile_t, h_dim), lambda t, s: (t, 0)),    # d1'  (targets)
                pl.BlockSpec((tile_t, h_dim), lambda t, s: (t, 0)),    # p1t' (targets)
                pl.BlockSpec((h_dim, tile_s), lambda t, s: (0, s)),    # s1^T   (sources)
                pl.BlockSpec((h_dim, tile_s), lambda t, s: (0, s)),    # p1s^T  (sources)
                pl.BlockSpec((c_out, tile_s), lambda t, s: (0, s)),    # (lin(x)+bp2)^T (sources)
                smem, smem, smem,                                       # wa1, wp2, wa2
            ],
            out_specs=pl.BlockSpec((tile_t, c_out), lambda t, s: (t, 0)),
            scratch_shapes=[
                pltpu.VMEM((tile_t, c_out), f32),    # running max
                pltpu.VMEM((tile_t, c_out), f32),    # running denominator
                pltpu.VMEM((tile_t, c_out), f32),    # running numerator
            ],
        ),
        compiler_params=pltpu.CompilerParams(
            dimension_semantics=("parallel", "arbitrary"),
            vmem_limit_bytes=32 * 1024 * 1024,
        ),
    )(bias_adj, d1, p1t, s1_t, p1s_t, xlin_t,
      params["wa1"], params["wp2"], params["wa2"])

    return out_pad[:n]


# --------------------------------------------------------------------------- #
# Pure-JAX dense reference (golden)
# --------------------------------------------------------------------------- #
def point_trans_ref(x, pos, adj, params):
    """adj: (N_tgt, N_src), adj[i, j] = 1 iff edge j -> i."""
    x = x.astype(jnp.float32)
    pos = pos.astype(jnp.float32)
    x_lin = jnp.dot(x, params["w_lin"], precision=_HP)
    a_src = jnp.dot(x, params["w_src"], precision=_HP)
    a_dst = jnp.dot(x, params["w_dst"], precision=_HP)

    dpos = pos[:, None, :] - pos[None, :, :]                           # (i, j, 3)
    h1 = jnp.maximum(jnp.matmul(dpos, params["wp1"], precision=_HP) + params["bp1"][0], 0.0)
    delta = jnp.matmul(h1, params["wp2"], precision=_HP) + params["bp2"][0]   # (i, j, C)

    da = a_dst[:, None, :] - a_src[None, :, :] + delta
    h2 = jnp.maximum(jnp.matmul(da, params["wa1"], precision=_HP) + params["ba1"][0], 0.0)
    alpha = jnp.matmul(h2, params["wa2"], precision=_HP) + params["ba2"][0]

    mask = adj[:, :, None] > 0.5
    alpha = jnp.where(mask, alpha, -1e30)
    alpha = alpha - jnp.max(alpha, axis=1, keepdims=True)
    p = jnp.where(mask, jnp.exp(alpha), 0.0)
    attn = p / jnp.sum(p, axis=1, keepdims=True)
    return jnp.sum(attn * (x_lin[None, :, :] + delta), axis=1)


# --------------------------------------------------------------------------- #
# Parameters (PyG-style uniform init); MLP BatchNorm folded to identity.
# --------------------------------------------------------------------------- #
def init_params(key, c_in, c_out):
    ks = jax.random.split(key, 11)

    def lin_w(k, fin, fout):
        b = 1.0 / math.sqrt(fin)
        return jax.random.uniform(k, (fin, fout), jnp.float32, -b, b)

    def lin_b(k, fin, fout):
        b = 1.0 / math.sqrt(fin)
        return jax.random.uniform(k, (1, fout), jnp.float32, -b, b)

    return {
        # PointTransformerConv internal projections (bias=False)
        "w_lin": lin_w(ks[0], c_in, c_out),
        "w_src": lin_w(ks[1], c_in, c_out),
        "w_dst": lin_w(ks[2], c_in, c_out),
        # pos_nn = MLP(3 -> c_out -> c_out)
        "wp1": lin_w(ks[3], 3, c_out),     "bp1": lin_b(ks[4], 3, c_out),
        "wp2": lin_w(ks[5], c_out, c_out), "bp2": lin_b(ks[6], c_out, c_out),
        # attn_nn = MLP(c_out -> c_out -> c_out)
        "wa1": lin_w(ks[7], c_out, c_out), "ba1": lin_b(ks[8], c_out, c_out),
        "wa2": lin_w(ks[9], c_out, c_out), "ba2": lin_b(ks[10], c_out, c_out),
    }


if __name__ == "__main__":
    N, C_IN, C_OUT = 256, 3, 3        # module defaults: in_channels=3, out_channels=3
    root = jax.random.PRNGKey(0)
    k_x, k_pos, k_par = jax.random.split(root, 3)

    x = jax.random.normal(k_x, (N, C_IN), jnp.float32)       # data.x
    pos = jax.random.normal(k_pos, (N, 3), jnp.float32)      # data.pos
    params = init_params(k_par, C_IN, C_OUT)

    # Small synthetic directed graph; edge_index convention: row 0 = source j, row 1 = target i.
    ids = jnp.arange(N, dtype=jnp.int32)
    src = jnp.concatenate([(ids - 1) % N, (ids - 2) % N, (ids + 3) % N])
    dst = jnp.concatenate([ids, ids, ids])

    # Dense target-major adjacency; PointTransformerConv removes then re-adds self loops.
    adj = jnp.zeros((N, N), jnp.float32).at[dst, src].set(1.0)
    eye = jnp.eye(N, dtype=jnp.float32)
    adj = adj * (1.0 - eye) + eye

    # tile_s=128 -> two source tiles, exercising the online-softmax accumulation path.
    out = jax.block_until_ready(
        point_trans_forward(x, pos, adj, params, tile_t=128, tile_s=128))

    ref = point_trans_ref(x, pos, adj, params)
    if not jnp.allclose(out, ref, atol=1e-2, rtol=1e-2):
        max_err = float(jnp.max(jnp.abs(out - ref)))
        raise AssertionError(f"Pallas kernel mismatch vs reference, max abs err = {max_err}")

    print("KERNEL_OK")
</pallas_src>

<mosaic_0001>
module attributes {stable_mosaic.version = 11 : i64} {
  func.func @proj_kernel(%arg0: i32, %arg1: memref<128x3xf32, #tpu.memory_space<vmem>>, %arg2: memref<128x3xf32, #tpu.memory_space<vmem>>, %arg3: memref<3x3xf32, #tpu.memory_space<vmem>>, %arg4: memref<3x3xf32, #tpu.memory_space<vmem>>, %arg5: memref<3x3xf32, #tpu.memory_space<vmem>>, %arg6: memref<3x3xf32, #tpu.memory_space<vmem>>, %arg7: memref<1x3xf32, #tpu.memory_space<vmem>>, %arg8: memref<1x3xf32, #tpu.memory_space<vmem>>, %arg9: memref<1x3xf32, #tpu.memory_space<vmem>>, %arg10: memref<128x3xf32, #tpu.memory_space<vmem>>, %arg11: memref<128x3xf32, #tpu.memory_space<vmem>>, %arg12: memref<128x3xf32, #tpu.memory_space<vmem>>, %arg13: memref<128x3xf32, #tpu.memory_space<vmem>>, %arg14: memref<128x3xf32, #tpu.memory_space<vmem>>) attributes {dimension_semantics = [#tpu.dimension_semantics<parallel>], iteration_bounds = array<i64: 2>, scalar_prefetch = 0 : i64, scratch_operands = 0 : i64, tpu.core_type = #tpu.core_type<tc>, window_params = [{transform_indices = @transform_0, window_bounds = array<i64: 128, 3>}, {transform_indices = @transform_1, window_bounds = array<i64: 128, 3>}, {pipeline_mode = #tpu.pipeline_mode<synchronous>, transform_indices = @transform_2, window_bounds = array<i64: 3, 3>}, {pipeline_mode = #tpu.pipeline_mode<synchronous>, transform_indices = @transform_3, window_bounds = array<i64: 3, 3>}, {pipeline_mode = #tpu.pipeline_mode<synchronous>, transform_indices = @transform_4, window_bounds = array<i64: 3, 3>}, {pipeline_mode = #tpu.pipeline_mode<synchronous>, transform_indices = @transform_5, window_bounds = array<i64: 3, 3>}, {pipeline_mode = #tpu.pipeline_mode<synchronous>, transform_indices = @transform_6, window_bounds = array<i64: 1, 3>}, {pipeline_mode = #tpu.pipeline_mode<synchronous>, transform_indices = @transform_7, window_bounds = array<i64: 1, 3>}, {pipeline_mode = #tpu.pipeline_mode<synchronous>, transform_indices = @transform_8, window_bounds = array<i64: 1, 3>}, {transform_indices = @transform_9, window_bounds = array<i64: 128, 3>}, {transform_indices = @transform_10, window_bounds = array<i64: 128, 3>}, {transform_indices = @transform_11, window_bounds = array<i64: 128, 3>}, {transform_indices = @transform_12, window_bounds = array<i64: 128, 3>}, {transform_indices = @transform_13, window_bounds = array<i64: 128, 3>}]} {
    %c0 = arith.constant 0 : index
    %c0_0 = arith.constant 0 : index
    %0 = vector.load %arg1[%c0, %c0_0] : memref<128x3xf32, #tpu.memory_space<vmem>>, vector<128x3xf32>
    %c0_1 = arith.constant 0 : index
    %c0_2 = arith.constant 0 : index
    %1 = vector.load %arg2[%c0_1, %c0_2] : memref<128x3xf32, #tpu.memory_space<vmem>>, vector<128x3xf32>
    %c0_3 = arith.constant 0 : index
    %c0_4 = arith.constant 0 : index
    %2 = vector.load %arg6[%c0_3, %c0_4] : memref<3x3xf32, #tpu.memory_space<vmem>>, vector<3x3xf32>
    %cst = arith.constant dense<0.000000e+00> : vector<128x3xf32>
    %3 = tpu.matmul %1, %2, %cst {dimension_numbers = #tpu.dot_dimension_numbers<[1], [0], [0], [1], [0, 0, 1, 1], [], []>} : vector<128x3xf32>, vector<3x3xf32>, vector<128x3xf32> -> vector<128x3xf32>
    %c0_5 = arith.constant 0 : index
    %c0_6 = arith.constant 0 : index
    %4 = vector.load %arg3[%c0_5, %c0_6] : memref<3x3xf32, #tpu.memory_space<vmem>>, vector<3x3xf32>
    %cst_7 = arith.constant dense<0.000000e+00> : vector<128x3xf32>
    %5 = tpu.matmul %0, %4, %cst_7 {dimension_numbers = #tpu.dot_dimension_numbers<[1], [0], [0], [1], [0, 0, 1, 1], [], []>} : vector<128x3xf32>, vector<3x3xf32>, vector<128x3xf32> -> vector<128x3xf32>
    %c0_8 = arith.constant 0 : index
    %c0_9 = arith.constant 0 : index
    %6 = vector.load %arg7[%c0_8, %c0_9] : memref<1x3xf32, #tpu.memory_space<vmem>>, vector<1x3xf32>
    %7 = vector.broadcast %6 : vector<1x3xf32> to vector<128x3xf32>
    %8 = arith.addf %5, %7 : vector<128x3xf32>
    %c0_10 = arith.constant 0 : index
    %c0_11 = arith.constant 0 : index
    %9 = vector.load %arg10[%c0_10, %c0_11] : memref<128x3xf32, #tpu.memory_space<vmem>>, vector<128x3xf32>
    tpu.vector_store %arg10[%c0_10, %c0_11], %8 {strides = array<i32>} : memref<128x3xf32, #tpu.memory_space<vmem>>, vector<128x3xf32>,
    %c0_12 = arith.constant 0 : index
    %c0_13 = arith.constant 0 : index
    %10 = vector.load %arg4[%c0_12, %c0_13] : memref<3x3xf32, #tpu.memory_space<vmem>>, vector<3x3xf32>
    %cst_14 = arith.constant dense<0.000000e+00> : vector<128x3xf32>
    %11 = tpu.matmul %0, %10, %cst_14 {dimension_numbers = #tpu.dot_dimension_numbers<[1], [0], [0], [1], [0, 0, 1, 1], [], []>} : vector<128x3xf32>, vector<3x3xf32>, vector<128x3xf32> -> vector<128x3xf32>
    %c0_15 = arith.constant 0 : index
    %c0_16 = arith.constant 0 : index
    %12 = vector.load %arg11[%c0_15, %c0_16] : memref<128x3xf32, #tpu.memory_space<vmem>>, vector<128x3xf32>
    tpu.vector_store %arg11[%c0_15, %c0_16], %11 {strides = array<i32>} : memref<128x3xf32, #tpu.memory_space<vmem>>, vector<128x3xf32>,
    %c0_17 = arith.constant 0 : index
    %c0_18 = arith.constant 0 : index
    %13 = vector.load %arg5[%c0_17, %c0_18] : memref<3x3xf32, #tpu.memory_space<vmem>>, vector<3x3xf32>
    %cst_19 = arith.constant dense<0.000000e+00> : vector<128x3xf32>
    %14 = tpu.matmul %0, %13, %cst_19 {dimension_numbers = #tpu.dot_dimension_numbers<[1], [0], [0], [1], [0, 0, 1, 1], [], []>} : vector<128x3xf32>, vector<3x3xf32>, vector<128x3xf32> -> vector<128x3xf32>
    %c0_20 = arith.constant 0 : index
    %c0_21 = arith.constant 0 : index
    %15 = vector.load %arg8[%c0_20, %c0_21] : memref<1x3xf32, #tpu.memory_space<vmem>>, vector<1x3xf32>
    %16 = vector.broadcast %15 : vector<1x3xf32> to vector<128x3xf32>
    %17 = arith.addf %14, %16 : vector<128x3xf32>
    %c0_22 = arith.constant 0 : index
    %c0_23 = arith.constant 0 : index
    %18 = vector.load %arg12[%c0_22, %c0_23] : memref<128x3xf32, #tpu.memory_space<vmem>>, vector<128x3xf32>
    tpu.vector_store %arg12[%c0_22, %c0_23], %17 {strides = array<i32>} : memref<128x3xf32, #tpu.memory_space<vmem>>, vector<128x3xf32>,
    %c0_24 = arith.constant 0 : index
    %c0_25 = arith.constant 0 : index
    %19 = vector.load %arg13[%c0_24, %c0_25] : memref<128x3xf32, #tpu.memory_space<vmem>>, vector<128x3xf32>
    tpu.vector_store %arg13[%c0_24, %c0_25], %3 {strides = array<i32>} : memref<128x3xf32, #tpu.memory_space<vmem>>, vector<128x3xf32>,
    %c0_26 = arith.constant 0 : index
    %c0_27 = arith.constant 0 : index
    %20 = vector.load %arg9[%c0_26, %c0_27] : memref<1x3xf32, #tpu.memory_space<vmem>>, vector<1x3xf32>
    %21 = vector.broadcast %20 : vector<1x3xf32> to vector<128x3xf32>
    %22 = arith.addf %3, %21 : vector<128x3xf32>
    %c0_28 = arith.constant 0 : index
    %c0_29 = arith.constant 0 : index
    %23 = vector.load %arg14[%c0_28, %c0_29] : memref<128x3xf32, #tpu.memory_space<vmem>>, vector<128x3xf32>
    tpu.vector_store %arg14[%c0_28, %c0_29], %22 {strides = array<i32>} : memref<128x3xf32, #tpu.memory_space<vmem>>, vector<128x3xf32>,
    return
  }
  func.func @transform_0(%arg0: i32) -> (i32, i32) {
    %c0_i32 = arith.constant 0 : i32
    %c0_i32_0 = arith.constant 0 : i32
    return %arg0, %c0_i32 : i32, i32
  }
  func.func @transform_1(%arg0: i32) -> (i32, i32) {
    %c0_i32 = arith.constant 0 : i32
    %c0_i32_0 = arith.constant 0 : i32
    return %arg0, %c0_i32 : i32, i32
  }
  func.func @transform_2(%arg0: i32) -> (i32, i32) {
    %c0_i32 = arith.constant 0 : i32
    %c0_i32_0 = arith.constant 0 : i32
    %c0_i32_1 = arith.constant 0 : i32
    return %c0_i32, %c0_i32_0 : i32, i32
  }
  func.func @transform_3(%arg0: i32) -> (i32, i32) {
    %c0_i32 = arith.constant 0 : i32
    %c0_i32_0 = arith.constant 0 : i32
    %c0_i32_1 = arith.constant 0 : i32
    return %c0_i32, %c0_i32_0 : i32, i32
  }
  func.func @transform_4(%arg0: i32) -> (i32, i32) {
    %c0_i32 = arith.constant 0 : i32
    %c0_i32_0 = arith.constant 0 : i32
    %c0_i32_1 = arith.constant 0 : i32
    return %c0_i32, %c0_i32_0 : i32, i32
  }
  func.func @transform_5(%arg0: i32) -> (i32, i32) {
    %c0_i32 = arith.constant 0 : i32
    %c0_i32_0 = arith.constant 0 : i32
    %c0_i32_1 = arith.constant 0 : i32
    return %c0_i32, %c0_i32_0 : i32, i32
  }
  func.func @transform_6(%arg0: i32) -> (i32, i32) {
    %c0_i32 = arith.constant 0 : i32
    %c0_i32_0 = arith.constant 0 : i32
    %c0_i32_1 = arith.constant 0 : i32
    return %c0_i32, %c0_i32_0 : i32, i32
  }
  func.func @transform_7(%arg0: i32) -> (i32, i32) {
    %c0_i32 = arith.constant 0 : i32
    %c0_i32_0 = arith.constant 0 : i32
    %c0_i32_1 = arith.constant 0 : i32
    return %c0_i32, %c0_i32_0 : i32, i32
  }
  func.func @transform_8(%arg0: i32) -> (i32, i32) {
    %c0_i32 = arith.constant 0 : i32
    %c0_i32_0 = arith.constant 0 : i32
    %c0_i32_1 = arith.constant 0 : i32
    return %c0_i32, %c0_i32_0 : i32, i32
  }
  func.func @transform_9(%arg0: i32) -> (i32, i32) {
    %c0_i32 = arith.constant 0 : i32
    %c0_i32_0 = arith.constant 0 : i32
    return %arg0, %c0_i32 : i32, i32
  }
  func.func @transform_10(%arg0: i32) -> (i32, i32) {
    %c0_i32 = arith.constant 0 : i32
    %c0_i32_0 = arith.constant 0 : i32
    return %arg0, %c0_i32 : i32, i32
  }
  func.func @transform_11(%arg0: i32) -> (i32, i32) {
    %c0_i32 = arith.constant 0 : i32
    %c0_i32_0 = arith.constant 0 : i32
    return %arg0, %c0_i32 : i32, i32
  }
  func.func @transform_12(%arg0: i32) -> (i32, i32) {
    %c0_i32 = arith.constant 0 : i32
    %c0_i32_0 = arith.constant 0 : i32
    return %arg0, %c0_i32 : i32, i32
  }
  func.func @transform_13(%arg0: i32) -> (i32, i32) {
    %c0_i32 = arith.constant 0 : i32
    %c0_i32_0 = arith.constant 0 : i32
    return %arg0, %c0_i32 : i32, i32
  }
}

</mosaic_0001>

<bundles_post_ra>
// kernel: tpu_custom_call.1
= control target key start
LH: loop header
LB: loop body
LE: loop exit
PB: predicated region body
PF: predicated region fallthrough
CT: control target
= control target key end

     0   :  { %s1916_s25 = smov 0   ;;  %s2325_s0 = inlined_call_operand.vmem [shape: f32[256,3], index: 0, kind: input, shape index: {}]   ;;  %s2326_s1 = inlined_call_operand.vmem [shape: f32[256,3], index: 1, kind: input, shape index: {}]   ;;  %s2327_s2 = inlined_call_operand.vmem [shape: f32[3,3], index: 2, kind: input, shape index: {}]   ;;  %s2328_s3 = inlined_call_operand.vmem [shape: f32[3,3], index: 3, kind: input, shape index: {}]   ;;  %s2329_s4 = inlined_call_operand.vmem [shape: f32[3,3], index: 4, kind: input, shape index: {}]   ;;  %s2330_s5 = inlined_call_operand.vmem [shape: f32[3,3], index: 5, kind: input, shape index: {}]   ;;  %s2331_s6 = inlined_call_operand.vmem [shape: f32[1,3], index: 6, kind: input, shape index: {}]   ;;  %s2332_s7 = inlined_call_operand.vmem [shape: f32[1,3], index: 7, kind: input, shape index: {}]   ;;  %s2333_s8 = inlined_call_operand.vmem [shape: f32[1,3], index: 8, kind: input, shape index: {}]   ;;  %s2334_s9 = inlined_call_operand.vmem [shape: f32[256,3], index: 9, kind: output, shape index: {0}]   ;;  %s2335_s10 = inlined_call_operand.vmem [shape: f32[256,3], index: 10, kind: output, shape index: {1}]   ;;  %s2336_s11 = inlined_call_operand.vmem [shape: f32[256,3], index: 11, kind: output, shape index: {2}]   ;;  %s2337_s12 = inlined_call_operand.vmem [shape: f32[256,3], index: 12, kind: output, shape index: {3}]   ;;  %s2338_s13 = inlined_call_operand.vmem [shape: f32[256,3], index: 13, kind: output, shape index: {4}]  }
   0x1 LB: > { %s1566_s26 = sadd.s32 4294967295, %s1844_s25   ;;  %p1570_p0 = scmp.ge.s32.totalorder %s1844_s25, 1  ;;  %s1844_s25 = sphi %s1916_s25, %s24_s25  }
   0x2   : > { %p408_p1 = scmp.lt.s32.totalorder %s1844_s25, 3 }
   0x4   : > { %p409_p2 = pnand %p1570_p0, %p408_p1 }
   0x5   : > { %vm601_vm0 = vcmask (!%p409_p2), 1042432   ;;  %v750_v0 = vld [vmem:[%s2327_s2] sm:$0x7] (!%p409_p2)  ;;  %s1571_s14 = sshll.u32 (!%p409_p2), %s1566_s26, 4  ;;  %vm552_vm1 = vcmask (!%p409_p2), 23552  }
   0x6   : > { %412 = sbr.rel (%p409_p2) target bundleno = 294 (0x126), region = 56  ;;  %v551_v1 = vld [vmem:[%s2330_s5] sm:$0x7] (!%p409_p2)  ;;  %1752 = vmatprep.subr.msk.mxu1 (!%p409_p2), %vm601_vm0, %v750_v0  ;;  %p478_p3 = scmp.lt.s32.totalorder (!%p409_p2), %s1571_s14, 31 }
   0x7   : > { %1726 = vmatprep.subr.msk.mxu0 (!%p409_p2), %vm601_vm0, %v551_v1  ;;  %v1135_v2 = vld [vmem:[%s2329_s4] sm:$0x7] (!%p409_p2)  ;;  %1753 = vmatpush3.msk.msra.mxu1 (!%p409_p2), %vm601_vm0, %v750_v0 }
   0x8   : > { %v970_v3 = vld [vmem:[%s2328_s3] sm:$0x7] (!%p409_p2)  ;;  %1727 = vmatpush3.msk.msra.mxu0 (!%p409_p2), %vm601_vm0, %v551_v1  ;;  %1804 = vmatprep.subr.msk.mxu1 (!%p409_p2), %vm601_vm0, %v1135_v2 }
   0x9   : > { %1778 = vmatprep.subr.msk.mxu0 (!%p409_p2), %vm601_vm0, %v970_v3  ;;  %v2072_v36 = vld [vmem:[%s2331_s6] ss:$0 sm:$0xff] (!%p409_p2) }
   0xa   : > { %v2083_v37 = vld [vmem:[%s2333_s8] ss:$0 sm:$0xff] (!%p409_p2) }
   0xd   : > { %s2340_s14 = smov (!%p478_p3, %s1571_s14), 31 }
   0xe   : > { %s1942_s19 = sshll.u32 %s2340_s14, 3 }
   0xf   : > { %s1948_s22 = scalar_lea.vmem %s2325_s0, %s1942_s19  ;;  %s1954_s26 = scalar_lea.vmem %s2326_s1, %s1942_s19 }
  0x10   : > { %v1957_v4 = vld [vmem:[%s1948_s22] sm:$0xff]  ;;  %v1961_v6 = vld [vmem:[%s1948_s22 + $0x8] sm:$0xff]  ;;  %v1968_v8 = vld [vmem:[%s1948_s22 + $0x10] sm:$0xff]  ;;  %s2078_s14 = scalar_lea.vmem %s2337_s12, %s1942_s19  ;;  %s2089_s20 = scalar_lea.vmem %s2334_s9, %s1942_s19 }
  0x11   : > { %v535_v5 = vld [vmem:[%s1954_s26] sm:$0xff]  ;;  %1754 = vmatprep.mubr.msk.f32.mxu1 %vm552_vm1, %v1957_v4  ;;  %v536_v7 = vld [vmem:[%s1954_s26 + $0x8] sm:$0xff]  ;;  %v537_v9 = vld [vmem:[%s1954_s26 + $0x10] sm:$0xff]  ;;  %s2095_s23 = scalar_lea.vmem %s2338_s13, %s1942_s19  ;;  %s2226_s29 = scalar_lea.vmem %s2335_s10, %s1942_s19 }
  0x12   : > { %1728 = vmatprep.mubr.msk.f32.mxu0 %vm552_vm1, %v535_v5  ;;  %1755 = vmatmul.mubr.msk.f32.vlgmr.msra.gmra.mrb[0].mxu1 %vm552_vm1, %v1961_v6  ;;  %v522_v10 = vld [vmem:[%s1948_s22 + $0x18] sm:$0xff]  ;;  %v523_v12 = vld [vmem:[%s1948_s22 + $0x20] sm:$0xff]  ;;  %v524_v14 = vld [vmem:[%s1948_s22 + $0x28] sm:$0xff]  ;;  %s2240_s15 = scalar_lea.vmem %s2336_s11, %s1942_s19 }
  0x13   : > { %1729 = vmatmul.mubr.msk.f32.vlgmr.msra.gmra.mrb[0].mxu0 %vm552_vm1, %v536_v7  ;;  %1805 = vmatpush3.msk.msra.mxu1 %vm601_vm0, %v1135_v2  ;;  %v538_v11 = vld [vmem:[%s1954_s26 + $0x18] sm:$0xff]  ;;  %v539_v13 = vld [vmem:[%s1954_s26 + $0x20] sm:$0xff]  ;;  %v540_v15 = vld [vmem:[%s1954_s26 + $0x28] sm:$0xff] }
  0x14   : > { %1779 = vmatpush3.msk.msra.mxu0 %vm601_vm0, %v970_v3  ;;  %1757 = vmatprep.mubr.msk.f32.mxu1 %vm552_vm1, %v1968_v8  ;;  %v525_v16 = vld [vmem:[%s1948_s22 + $0x30] sm:$0xff]  ;;  %v526_v18 = vld [vmem:[%s1948_s22 + $0x38] sm:$0xff]  ;;  %v527_v20 = vld [vmem:[%s1948_s22 + $0x40] sm:$0xff] }
  0x15   : > { %1731 = vmatprep.mubr.msk.f32.mxu0 %vm552_vm1, %v537_v9  ;;  %v541_v17 = vld [vmem:[%s1954_s26 + $0x30] sm:$0xff]  ;;  %v542_v19 = vld [vmem:[%s1954_s26 + $0x38] sm:$0xff]  ;;  %v543_v21 = vld [vmem:[%s1954_s26 + $0x40] sm:$0xff] }
  0x16   : > { %1758 = vmatmul.mubr.msk.f32.gmra.mrb[2].mxu1 %vm552_vm1, %v522_v10  ;;  %v528_v22 = vld [vmem:[%s1948_s22 + $0x48] sm:$0xff]  ;;  %v529_v24 = vld [vmem:[%s1948_s22 + $0x50] sm:$0xff]  ;;  %v530_v26 = vld [vmem:[%s1948_s22 + $0x58] sm:$0xff] }
  0x17   : > { %1732 = vmatmul.mubr.msk.f32.gmra.mrb[2].mxu0 %vm552_vm1, %v538_v11  ;;  %1760 = vmatprep.mubr.msk.f32.mxu1 %vm552_vm1, %v523_v12  ;;  %v544_v23 = vld [vmem:[%s1954_s26 + $0x48] sm:$0xff]  ;;  %v545_v25 = vld [vmem:[%s1954_s26 + $0x50] sm:$0xff]  ;;  %v546_v27 = vld [vmem:[%s1954_s26 + $0x58] sm:$0xff] }
  0x18   : > { %1734 = vmatprep.mubr.msk.f32.mxu0 %vm552_vm1, %v539_v13  ;;  %v531_v28 = vld [vmem:[%s1948_s22 + $0x60] sm:$0xff]  ;;  %v532_v30 = vld [vmem:[%s1948_s22 + $0x68] sm:$0xff]  ;;  %v533_v32 = vld [vmem:[%s1948_s22 + $0x70] sm:$0xff] }
  0x19   : > { %v547_v29 = vld [vmem:[%s1954_s26 + $0x60] sm:$0xff]  ;;  %v548_v31 = vld [vmem:[%s1954_s26 + $0x68] sm:$0xff]  ;;  %v549_v33 = vld [vmem:[%s1954_s26 + $0x70] sm:$0xff] }
  0x1a   : > { %1761 = vmatmul.mubr.msk.f32.gmra.mrb[4].mxu1 %vm552_vm1, %v524_v14  ;;  %v534_v34 = vld [vmem:[%s1948_s22 + $0x78] sm:$0xff] }
  0x1b   : > { %1735 = vmatmul.mubr.msk.f32.gmra.mrb[4].mxu0 %vm552_vm1, %v540_v15  ;;  %1763 = vmatprep.mubr.msk.f32.mxu1 %vm552_vm1, %v525_v16  ;;  %v550_v35 = vld [vmem:[%s1954_s26 + $0x78] sm:$0xff] }
  0x1c   : > { %1737 = vmatprep.mubr.msk.f32.mxu0 %vm552_vm1, %v541_v17 }
  0x1e   : > { %1764 = vmatmul.mubr.msk.f32.gmra.mrb[6].mxu1 %vm552_vm1, %v526_v18 }
  0x1f   : > { %1738 = vmatmul.mubr.msk.f32.gmra.mrb[6].mxu0 %vm552_vm1, %v542_v19  ;;  %1766 = vmatprep.mubr.msk.f32.mxu1 %vm552_vm1, %v527_v20 }
  0x20   : > { %1740 = vmatprep.mubr.msk.f32.mxu0 %vm552_vm1, %v543_v21 }
  0x22   : > { %1767 = vmatmul.mubr.msk.f32.gmra.mrb[8].mxu1 %vm552_vm1, %v528_v22 }
  0x23   : > { %1741 = vmatmul.mubr.msk.f32.gmra.mrb[8].mxu0 %vm552_vm1, %v544_v23  ;;  %1769 = vmatprep.mubr.msk.f32.mxu1 %vm552_vm1, %v529_v24 }
  0x24   : > { %1743 = vmatprep.mubr.msk.f32.mxu0 %vm552_vm1, %v545_v25 }
  0x26   : > { %1770 = vmatmul.mubr.msk.f32.gmra.mrb[10].mxu1 %vm552_vm1, %v530_v26 }
  0x27   : > { %1744 = vmatmul.mubr.msk.f32.gmra.mrb[10].mxu0 %vm552_vm1, %v546_v27  ;;  %1772 = vmatprep.mubr.msk.f32.mxu1 %vm552_vm1, %v531_v28 }
  0x28   : > { %1746 = vmatprep.mubr.msk.f32.mxu0 %vm552_vm1, %v547_v29 }
  0x2a   : > { %1773 = vmatmul.mubr.msk.f32.gmra.mrb[12].mxu1 %vm552_vm1, %v532_v30 }
  0x2b   : > { %1747 = vmatmul.mubr.msk.f32.gmra.mrb[12].mxu0 %vm552_vm1, %v548_v31  ;;  %1775 = vmatprep.mubr.msk.f32.mxu1 %vm552_vm1, %v533_v32 }
  0x2c   : > { %1749 = vmatprep.mubr.msk.f32.mxu0 %vm552_vm1, %v549_v33 }
  0x2e   : > { %1776 = vmatmul.mubr.msk.f32.gmra.mrb[14].mxu1 %vm552_vm1, %v534_v34 }
  0x2f   : > { %1750 = vmatmul.mubr.msk.f32.gmra.mrb[14].mxu0 %vm552_vm1, %v550_v35  ;;  %1806 = vmatprep.mubr.msk.f32.mxu1 %vm552_vm1, %v1957_v4 }
  0x30   : > { %1780 = vmatprep.mubr.msk.f32.mxu0 %vm552_vm1, %v1957_v4 }
  0x32   : > { %1807 = vmatmul.mubr.msk.f32.vlgmr.msra.gmra.mrb[16].mxu1 %vm552_vm1, %v1961_v6 }
  0x33   : > { %1781 = vmatmul.mubr.msk.f32.vlgmr.msra.gmra.mrb[16].mxu0 %vm552_vm1, %v1961_v6  ;;  %1809 = vmatprep.mubr.msk.f32.mxu1 %vm552_vm1, %v1968_v8 }
  0x34   : > { %1783 = vmatprep.mubr.msk.f32.mxu0 %vm552_vm1, %v1968_v8 }
  0x36   : > { %1810 = vmatmul.mubr.msk.f32.gmra.mrb[18].mxu1 %vm552_vm1, %v522_v10 }
  0x37   : > { %1784 = vmatmul.mubr.msk.f32.gmra.mrb[18].mxu0 %vm552_vm1, %v522_v10  ;;  %1812 = vmatprep.mubr.msk.f32.mxu1 %vm552_vm1, %v523_v12 }
  0x38   : > { %1786 = vmatprep.mubr.msk.f32.mxu0 %vm552_vm1, %v523_v12 }
  0x3a   : > { %1813 = vmatmul.mubr.msk.f32.gmra.mrb[20].mxu1 %vm552_vm1, %v524_v14 }
  0x3b   : > { %1787 = vmatmul.mubr.msk.f32.gmra.mrb[20].mxu0 %vm552_vm1, %v524_v14  ;;  %1815 = vmatprep.mubr.msk.f32.mxu1 %vm552_vm1, %v525_v16 }
  0x3c   : > { %1789 = vmatprep.mubr.msk.f32.mxu0 %vm552_vm1, %v525_v16 }
  0x3e   : > { %1816 = vmatmul.mubr.msk.f32.gmra.mrb[22].mxu1 %vm552_vm1, %v526_v18 }
  0x3f   : > { %1790 = vmatmul.mubr.msk.f32.gmra.mrb[22].mxu0 %vm552_vm1, %v526_v18  ;;  %1818 = vmatprep.mubr.msk.f32.mxu1 %vm552_vm1, %v527_v20 }
  0x40   : > { %1792 = vmatprep.mubr.msk.f32.mxu0 %vm552_vm1, %v527_v20 }
  0x42   : > { %1819 = vmatmul.mubr.msk.f32.gmra.mrb[24].mxu1 %vm552_vm1, %v528_v22 }
  0x43   : > { %1793 = vmatmul.mubr.msk.f32.gmra.mrb[24].mxu0 %vm552_vm1, %v528_v22  ;;  %1821 = vmatprep.mubr.msk.f32.mxu1 %vm552_vm1, %v529_v24 }
  0x44   : > { %1795 = vmatprep.mubr.msk.f32.mxu0 %vm552_vm1, %v529_v24 }
  0x46   : > { %1822 = vmatmul.mubr.msk.f32.gmra.mrb[26].mxu1 %vm552_vm1, %v530_v26 }
  0x47   : > { %1796 = vmatmul.mubr.msk.f32.gmra.mrb[26].mxu0 %vm552_vm1, %v530_v26  ;;  %1824 = vmatprep.mubr.msk.f32.mxu1 %vm552_vm1, %v531_v28 }
  0x48   : > { %1798 = vmatprep.mubr.msk.f32.mxu0 %vm552_vm1, %v531_v28 }
  0x4a   : > { %1825 = vmatmul.mubr.msk.f32.gmra.mrb[28].mxu1 %vm552_vm1, %v532_v30 }
  0x4b   : > { %1799 = vmatmul.mubr.msk.f32.gmra.mrb[28].mxu0 %vm552_vm1, %v532_v30  ;;  %1827 = vmatprep.mubr.msk.f32.mxu1 %vm552_vm1, %v533_v32 }
  0x4c   : > { %1801 = vmatprep.mubr.msk.f32.mxu0 %vm552_vm1, %v533_v32 }
  0x4e   : > { %1828 = vmatmul.mubr.msk.f32.gmra.mrb[30].mxu1 %vm552_vm1, %v534_v34 }
  0x4f   : > { %1802 = vmatmul.mubr.msk.f32.gmra.mrb[30].mxu0 %vm552_vm1, %v534_v34 }
  0xe5   : > { %v1756_v38 = vpop.f32.mrb[0].mxu1 }
  0xe6   : > { %v1730_v39 = vpop.f32.mrb[0].mxu0  ;;  %v881_v40 = vadd.f32 %v1756_v38, %v2072_v36  ;;  %v875_v42 = vpop.f32.mrb[1].mxu1 }
  0xe7   : > { %1308 = vst.msk [vmem:[%s2078_s14 + $0x8] sm:$0xff] %vm552_vm1, %v1730_v39  ;;  %v1331_v41 = vadd.f32 %v1730_v39, %v2083_v37  ;;  %v671_v43 = vpop.f32.mrb[1].mxu0  ;;  %v876_v44 = vadd.f32 %v2072_v36, %v875_v42 }
  0xe8   : > { %1307 = vst.msk [vmem:[%s2078_s14] sm:$0xff] %vm552_vm1, %v671_v43  ;;  %v1330_v45 = vadd.f32 %v2083_v37, %v671_v43  ;;  %955 = vst.msk [vmem:[%s2089_s20 + $0x8] sm:$0xff] %vm552_vm1, %v881_v40  ;;  %v2220_v40 = vld [vmem:[%s2332_s7] ss:$0 sm:$0xff] }
  0xe9   : > { %1347 = vst.msk [vmem:[%s2095_s23 + $0x8] sm:$0xff] %vm552_vm1, %v1331_v41  ;;  %954 = vst.msk [vmem:[%s2089_s20] sm:$0xff] %vm552_vm1, %v876_v44  ;;  %v1759_v46 = vpop.f32.mrb[2].mxu1 }
  0xea   : > { %1346 = vst.msk [vmem:[%s2095_s23] sm:$0xff] %vm552_vm1, %v1330_v45  ;;  %v1733_v47 = vpop.f32.mrb[2].mxu0  ;;  %v891_v48 = vadd.f32 %v1759_v46, %v2072_v36  ;;  %v885_v50 = vpop.f32.mrb[3].mxu1 }
  0xeb   : > { %1310 = vst.msk [vmem:[%s2078_s14 + $0x18] sm:$0xff] %vm552_vm1, %v1733_v47  ;;  %v1333_v49 = vadd.f32 %v1733_v47, %v2083_v37  ;;  %v681_v51 = vpop.f32.mrb[3].mxu0  ;;  %v886_v52 = vadd.f32 %v2072_v36, %v885_v50 }
  0xec   : > { %1309 = vst.msk [vmem:[%s2078_s14 + $0x10] sm:$0xff] %vm552_vm1, %v681_v51  ;;  %v1332_v53 = vadd.f32 %v2083_v37, %v681_v51  ;;  %957 = vst.msk [vmem:[%s2089_s20 + $0x18] sm:$0xff] %vm552_vm1, %v891_v48 }
  0xed   : > { %1349 = vst.msk [vmem:[%s2095_s23 + $0x18] sm:$0xff] %vm552_vm1, %v1333_v49  ;;  %956 = vst.msk [vmem:[%s2089_s20 + $0x10] sm:$0xff] %vm552_vm1, %v886_v52  ;;  %v1762_v54 = vpop.f32.mrb[4].mxu1 }
  0xee   : > { %1348 = vst.msk [vmem:[%s2095_s23 + $0x10] sm:$0xff] %vm552_vm1, %v1332_v53  ;;  %v1736_v55 = vpop.f32.mrb[4].mxu0  ;;  %v901_v56 = vadd.f32 %v1762_v54, %v2072_v36  ;;  %v895_v58 = vpop.f32.mrb[5].mxu1 }
  0xef   : > { %1312 = vst.msk [vmem:[%s2078_s14 + $0x28] sm:$0xff] %vm552_vm1, %v1736_v55  ;;  %v1335_v57 = vadd.f32 %v1736_v55, %v2083_v37  ;;  %v691_v59 = vpop.f32.mrb[5].mxu0  ;;  %v896_v60 = vadd.f32 %v2072_v36, %v895_v58 }
  0xf0   : > { %1311 = vst.msk [vmem:[%s2078_s14 + $0x20] sm:$0xff] %vm552_vm1, %v691_v59  ;;  %v1334_v61 = vadd.f32 %v2083_v37, %v691_v59  ;;  %959 = vst.msk [vmem:[%s2089_s20 + $0x28] sm:$0xff] %vm552_vm1, %v901_v56 }
  0xf1   : > { %1351 = vst.msk [vmem:[%s2095_s23 + $0x28] sm:$0xff] %vm552_vm1, %v1335_v57  ;;  %958 = vst.msk [vmem:[%s2089_s20 + $0x20] sm:$0xff] %vm552_vm1, %v896_v60  ;;  %v1765_v62 = vpop.f32.mrb[6].mxu1 }
  0xf2   : > { %1350 = vst.msk [vmem:[%s2095_s23 + $0x20] sm:$0xff] %vm552_vm1, %v1334_v61  ;;  %v1739_v63 = vpop.f32.mrb[6].mxu0  ;;  %v911_v0 = vadd.f32 %v1765_v62, %v2072_v36  ;;  %v905_v2 = vpop.f32.mrb[7].mxu1 }
  0xf3   : > { %1314 = vst.msk [vmem:[%s2078_s14 + $0x38] sm:$0xff] %vm552_vm1, %v1739_v63  ;;  %v1337_v1 = vadd.f32 %v1739_v63, %v2083_v37  ;;  %v701_v3 = vpop.f32.mrb[7].mxu0  ;;  %v906_v4 = vadd.f32 %v2072_v36, %v905_v2 }
  0xf4   : > { %1313 = vst.msk [vmem:[%s2078_s14 + $0x30] sm:$0xff] %vm552_vm1, %v701_v3  ;;  %v1336_v5 = vadd.f32 %v2083_v37, %v701_v3  ;;  %961 = vst.msk [vmem:[%s2089_s20 + $0x38] sm:$0xff] %vm552_vm1, %v911_v0 }
  0xf5   : > { %1353 = vst.msk [vmem:[%s2095_s23 + $0x38] sm:$0xff] %vm552_vm1, %v1337_v1  ;;  %960 = vst.msk [vmem:[%s2089_s20 + $0x30] sm:$0xff] %vm552_vm1, %v906_v4  ;;  %v1768_v6 = vpop.f32.mrb[8].mxu1 }
  0xf6   : > { %1352 = vst.msk [vmem:[%s2095_s23 + $0x30] sm:$0xff] %vm552_vm1, %v1336_v5  ;;  %v1742_v7 = vpop.f32.mrb[8].mxu0  ;;  %v921_v8 = vadd.f32 %v1768_v6, %v2072_v36  ;;  %v915_v10 = vpop.f32.mrb[9].mxu1 }
  0xf7   : > { %1316 = vst.msk [vmem:[%s2078_s14 + $0x48] sm:$0xff] %vm552_vm1, %v1742_v7  ;;  %v1339_v9 = vadd.f32 %v1742_v7, %v2083_v37  ;;  %v711_v11 = vpop.f32.mrb[9].mxu0  ;;  %v916_v12 = vadd.f32 %v2072_v36, %v915_v10 }
  0xf8   : > { %1315 = vst.msk [vmem:[%s2078_s14 + $0x40] sm:$0xff] %vm552_vm1, %v711_v11  ;;  %v1338_v13 = vadd.f32 %v2083_v37, %v711_v11  ;;  %963 = vst.msk [vmem:[%s2089_s20 + $0x48] sm:$0xff] %vm552_vm1, %v921_v8 }
  0xf9   : > { %1355 = vst.msk [vmem:[%s2095_s23 + $0x48] sm:$0xff] %vm552_vm1, %v1339_v9  ;;  %962 = vst.msk [vmem:[%s2089_s20 + $0x40] sm:$0xff] %vm552_vm1, %v916_v12  ;;  %v1771_v14 = vpop.f32.mrb[10].mxu1 }
  0xfa   : > { %1354 = vst.msk [vmem:[%s2095_s23 + $0x40] sm:$0xff] %vm552_vm1, %v1338_v13  ;;  %v1745_v15 = vpop.f32.mrb[10].mxu0  ;;  %v931_v16 = vadd.f32 %v1771_v14, %v2072_v36  ;;  %v925_v18 = vpop.f32.mrb[11].mxu1 }
  0xfb   : > { %1318 = vst.msk [vmem:[%s2078_s14 + $0x58] sm:$0xff] %vm552_vm1, %v1745_v15  ;;  %v1341_v17 = vadd.f32 %v1745_v15, %v2083_v37  ;;  %v721_v19 = vpop.f32.mrb[11].mxu0  ;;  %v926_v20 = vadd.f32 %v2072_v36, %v925_v18 }
  0xfc   : > { %1317 = vst.msk [vmem:[%s2078_s14 + $0x50] sm:$0xff] %vm552_vm1, %v721_v19  ;;  %v1340_v21 = vadd.f32 %v2083_v37, %v721_v19  ;;  %965 = vst.msk [vmem:[%s2089_s20 + $0x58] sm:$0xff] %vm552_vm1, %v931_v16 }
  0xfd   : > { %1357 = vst.msk [vmem:[%s2095_s23 + $0x58] sm:$0xff] %vm552_vm1, %v1341_v17  ;;  %964 = vst.msk [vmem:[%s2089_s20 + $0x50] sm:$0xff] %vm552_vm1, %v926_v20  ;;  %v1774_v22 = vpop.f32.mrb[12].mxu1 }
  0xfe   : > { %1356 = vst.msk [vmem:[%s2095_s23 + $0x50] sm:$0xff] %vm552_vm1, %v1340_v21  ;;  %v1748_v23 = vpop.f32.mrb[12].mxu0  ;;  %v941_v24 = vadd.f32 %v1774_v22, %v2072_v36  ;;  %v935_v26 = vpop.f32.mrb[13].mxu1 }
  0xff   : > { %1320 = vst.msk [vmem:[%s2078_s14 + $0x68] sm:$0xff] %vm552_vm1, %v1748_v23  ;;  %v1343_v25 = vadd.f32 %v1748_v23, %v2083_v37  ;;  %v731_v27 = vpop.f32.mrb[13].mxu0  ;;  %v936_v28 = vadd.f32 %v2072_v36, %v935_v26 }
 0x100   : > { %1319 = vst.msk [vmem:[%s2078_s14 + $0x60] sm:$0xff] %vm552_vm1, %v731_v27  ;;  %v1342_v29 = vadd.f32 %v2083_v37, %v731_v27  ;;  %967 = vst.msk [vmem:[%s2089_s20 + $0x68] sm:$0xff] %vm552_vm1, %v941_v24 }
 0x101   : > { %1359 = vst.msk [vmem:[%s2095_s23 + $0x68] sm:$0xff] %vm552_vm1, %v1343_v25  ;;  %966 = vst.msk [vmem:[%s2089_s20 + $0x60] sm:$0xff] %vm552_vm1, %v936_v28  ;;  %v1777_v30 = vpop.f32.mrb[14].mxu1 }
 0x102   : > { %1358 = vst.msk [vmem:[%s2095_s23 + $0x60] sm:$0xff] %vm552_vm1, %v1342_v29  ;;  %v1751_v31 = vpop.f32.mrb[14].mxu0  ;;  %v951_v32 = vadd.f32 %v1777_v30, %v2072_v36  ;;  %v945_v34 = vpop.f32.mrb[15].mxu1 }
 0x103   : > { %1322 = vst.msk [vmem:[%s2078_s14 + $0x78] sm:$0xff] %vm552_vm1, %v1751_v31  ;;  %v1345_v33 = vadd.f32 %v1751_v31, %v2083_v37  ;;  %v741_v35 = vpop.f32.mrb[15].mxu0  ;;  %v946_v38 = vadd.f32 %v2072_v36, %v945_v34 }
 0x104   : > { %1321 = vst.msk [vmem:[%s2078_s14 + $0x70] sm:$0xff] %vm552_vm1, %v741_v35  ;;  %v1344_v39 = vadd.f32 %v2083_v37, %v741_v35  ;;  %969 = vst.msk [vmem:[%s2089_s20 + $0x78] sm:$0xff] %vm552_vm1, %v951_v32 }
 0x105   : > { %1361 = vst.msk [vmem:[%s2095_s23 + $0x78] sm:$0xff] %vm552_vm1, %v1345_v33  ;;  %968 = vst.msk [vmem:[%s2089_s20 + $0x70] sm:$0xff] %vm552_vm1, %v946_v38  ;;  %v1808_v36 = vpop.f32.mrb[16].mxu1 }
 0x106   : > { %1360 = vst.msk [vmem:[%s2095_s23 + $0x70] sm:$0xff] %vm552_vm1, %v1344_v39  ;;  %v1782_v37 = vpop.f32.mrb[16].mxu0  ;;  %v1218_v41 = vadd.f32 %v1808_v36, %v2220_v40  ;;  %v1212_v42 = vpop.f32.mrb[17].mxu1 }
 0x107   : > { %1120 = vst.msk [vmem:[%s2226_s29 + $0x8] sm:$0xff] %vm552_vm1, %v1782_v37  ;;  %v1040_v43 = vpop.f32.mrb[17].mxu0  ;;  %v1213_v44 = vadd.f32 %v2220_v40, %v1212_v42 }
 0x108   : > { %1119 = vst.msk [vmem:[%s2226_s29] sm:$0xff] %vm552_vm1, %v1040_v43  ;;  %1292 = vst.msk [vmem:[%s2240_s15 + $0x8] sm:$0xff] %vm552_vm1, %v1218_v41 }
 0x109   : > { %1291 = vst.msk [vmem:[%s2240_s15] sm:$0xff] %vm552_vm1, %v1213_v44  ;;  %v1811_v45 = vpop.f32.mrb[18].mxu1 }
 0x10a   : > { %v1785_v46 = vpop.f32.mrb[18].mxu0  ;;  %v1228_v47 = vadd.f32 %v1811_v45, %v2220_v40  ;;  %v1222_v48 = vpop.f32.mrb[19].mxu1 }
 0x10b   : > { %1122 = vst.msk [vmem:[%s2226_s29 + $0x18] sm:$0xff] %vm552_vm1, %v1785_v46  ;;  %v1050_v49 = vpop.f32.mrb[19].mxu0  ;;  %v1223_v50 = vadd.f32 %v2220_v40, %v1222_v48 }
 0x10c   : > { %1121 = vst.msk [vmem:[%s2226_s29 + $0x10] sm:$0xff] %vm552_vm1, %v1050_v49  ;;  %1294 = vst.msk [vmem:[%s2240_s15 + $0x18] sm:$0xff] %vm552_vm1, %v1228_v47 }
 0x10d   : > { %1293 = vst.msk [vmem:[%s2240_s15 + $0x10] sm:$0xff] %vm552_vm1, %v1223_v50  ;;  %v1814_v51 = vpop.f32.mrb[20].mxu1 }
 0x10e   : > { %v1788_v52 = vpop.f32.mrb[20].mxu0  ;;  %v1238_v53 = vadd.f32 %v1814_v51, %v2220_v40  ;;  %v1232_v54 = vpop.f32.mrb[21].mxu1 }
 0x10f   : > { %1124 = vst.msk [vmem:[%s2226_s29 + $0x28] sm:$0xff] %vm552_vm1, %v1788_v52  ;;  %v1060_v55 = vpop.f32.mrb[21].mxu0  ;;  %v1233_v56 = vadd.f32 %v2220_v40, %v1232_v54 }
 0x110   : > { %1123 = vst.msk [vmem:[%s2226_s29 + $0x20] sm:$0xff] %vm552_vm1, %v1060_v55  ;;  %1296 = vst.msk [vmem:[%s2240_s15 + $0x28] sm:$0xff] %vm552_vm1, %v1238_v53 }
 0x111   : > { %1295 = vst.msk [vmem:[%s2240_s15 + $0x20] sm:$0xff] %vm552_vm1, %v1233_v56  ;;  %v1817_v57 = vpop.f32.mrb[22].mxu1 }
 0x112   : > { %v1791_v58 = vpop.f32.mrb[22].mxu0  ;;  %v1248_v59 = vadd.f32 %v1817_v57, %v2220_v40  ;;  %v1242_v60 = vpop.f32.mrb[23].mxu1 }
 0x113   : > { %1126 = vst.msk [vmem:[%s2226_s29 + $0x38] sm:$0xff] %vm552_vm1, %v1791_v58  ;;  %v1070_v61 = vpop.f32.mrb[23].mxu0  ;;  %v1243_v62 = vadd.f32 %v2220_v40, %v1242_v60 }
 0x114   : > { %1125 = vst.msk [vmem:[%s2226_s29 + $0x30] sm:$0xff] %vm552_vm1, %v1070_v61  ;;  %1298 = vst.msk [vmem:[%s2240_s15 + $0x38] sm:$0xff] %vm552_vm1, %v1248_v59 }
 0x115   : > { %1297 = vst.msk [vmem:[%s2240_s15 + $0x30] sm:$0xff] %vm552_vm1, %v1243_v62  ;;  %v1820_v63 = vpop.f32.mrb[24].mxu1 }
 0x116   : > { %v1794_v0 = vpop.f32.mrb[24].mxu0  ;;  %v1258_v1 = vadd.f32 %v1820_v63, %v2220_v40  ;;  %v1252_v2 = vpop.f32.mrb[25].mxu1 }
 0x117   : > { %1128 = vst.msk [vmem:[%s2226_s29 + $0x48] sm:$0xff] %vm552_vm1, %v1794_v0  ;;  %v1080_v3 = vpop.f32.mrb[25].mxu0  ;;  %v1253_v4 = vadd.f32 %v2220_v40, %v1252_v2 }
 0x118   : > { %1127 = vst.msk [vmem:[%s2226_s29 + $0x40] sm:$0xff] %vm552_vm1, %v1080_v3  ;;  %1300 = vst.msk [vmem:[%s2240_s15 + $0x48] sm:$0xff] %vm552_vm1, %v1258_v1 }
 0x119   : > { %1299 = vst.msk [vmem:[%s2240_s15 + $0x40] sm:$0xff] %vm552_vm1, %v1253_v4  ;;  %v1823_v5 = vpop.f32.mrb[26].mxu1 }
 0x11a   : > { %v1797_v6 = vpop.f32.mrb[26].mxu0  ;;  %v1268_v7 = vadd.f32 %v1823_v5, %v2220_v40  ;;  %v1262_v8 = vpop.f32.mrb[27].mxu1 }
 0x11b   : > { %1130 = vst.msk [vmem:[%s2226_s29 + $0x58] sm:$0xff] %vm552_vm1, %v1797_v6  ;;  %v1090_v9 = vpop.f32.mrb[27].mxu0  ;;  %v1263_v10 = vadd.f32 %v2220_v40, %v1262_v8 }
 0x11c   : > { %1129 = vst.msk [vmem:[%s2226_s29 + $0x50] sm:$0xff] %vm552_vm1, %v1090_v9  ;;  %1302 = vst.msk [vmem:[%s2240_s15 + $0x58] sm:$0xff] %vm552_vm1, %v1268_v7 }
 0x11d   : > { %1301 = vst.msk [vmem:[%s2240_s15 + $0x50] sm:$0xff] %vm552_vm1, %v1263_v10  ;;  %v1826_v11 = vpop.f32.mrb[28].mxu1 }
 0x11e   : > { %v1800_v12 = vpop.f32.mrb[28].mxu0  ;;  %v1278_v13 = vadd.f32 %v1826_v11, %v2220_v40  ;;  %v1272_v14 = vpop.f32.mrb[29].mxu1 }
 0x11f   : > { %1132 = vst.msk [vmem:[%s2226_s29 + $0x68] sm:$0xff] %vm552_vm1, %v1800_v12  ;;  %v1100_v15 = vpop.f32.mrb[29].mxu0  ;;  %v1273_v16 = vadd.f32 %v2220_v40, %v1272_v14 }
 0x120   : > { %1131 = vst.msk [vmem:[%s2226_s29 + $0x60] sm:$0xff] %vm552_vm1, %v1100_v15  ;;  %1304 = vst.msk [vmem:[%s2240_s15 + $0x68] sm:$0xff] %vm552_vm1, %v1278_v13 }
 0x121   : > { %1303 = vst.msk [vmem:[%s2240_s15 + $0x60] sm:$0xff] %vm552_vm1, %v1273_v16  ;;  %v1829_v17 = vpop.f32.mrb[30].mxu1 }
 0x122   : > { %v1803_v18 = vpop.f32.mrb[30].mxu0  ;;  %v1288_v19 = vadd.f32 %v1829_v17, %v2220_v40  ;;  %v1282_v20 = vpop.f32.mrb[31].mxu1 }
 0x123   : > { %1134 = vst.msk [vmem:[%s2226_s29 + $0x78] sm:$0xff] %vm552_vm1, %v1803_v18  ;;  %v1110_v21 = vpop.f32.mrb[31].mxu0  ;;  %v1283_v22 = vadd.f32 %v2220_v40, %v1282_v20 }
 0x124   : > { %1133 = vst.msk [vmem:[%s2226_s29 + $0x70] sm:$0xff] %vm552_vm1, %v1110_v21  ;;  %1306 = vst.msk [vmem:[%s2240_s15 + $0x78] sm:$0xff] %vm552_vm1, %v1288_v19 }
 0x125   : > { %1305 = vst.msk [vmem:[%s2240_s15 + $0x70] sm:$0xff] %vm552_vm1, %v1283_v22 }
 0x126 PF: > { %s24_s25 = sadd.s32 1, %s1844_s25  }
 0x127   : > { %p21_p4 = scmp.ge.s32.totalorder %s24_s25, 4  }
 0x129   :  { %23 = sbr.rel (!%p21_p4) target bundleno = 1 (0x1), region = 137 }

</bundles_post_ra>
